<compile_context>
chip_gen: v7x
topology: tpu7x:2x2x1
jax: 0.10.0
libtpu: 0.0.40
codegen_flags: <defaults>
</compile_context>

<pallas_src>
import math

import jax
import jax.numpy as jnp
from jax.experimental import pallas as pl


def _copy_kernel(x_ref, o_ref):
    # Bit-exact copy of the current tile.
    o_ref[...] = x_ref[...]


# Per-block byte target.  With double-buffered input + output tiles this is
# ~4x in VMEM (<= 8 MiB), comfortably inside the scoped VMEM default on
# v5e/v6e (32 MiB default / 128 MiB physical) and v7x (32 MiB / 64 MiB).
_BLOCK_BYTES = 2 * 1024 * 1024


def _choose_layout(total: int, itemsize: int):
    """Pick a vreg-dense (rows, lanes) layout and a row tile for a flat payload.

    Returns ((rows, lanes), tm) with rows % 8 == 0, lanes % 128 == 0,
    tm % 8 == 0 and tm dividing rows; or (None, None) if `total` has no
    8*128 factorization (handled by the full-extent fallback).
    """
    for lanes in (2048, 1024, 512, 256, 128):
        if total % (8 * lanes) == 0:
            rows = total // lanes
            max_rows = max(8, (_BLOCK_BYTES // (lanes * itemsize)) // 8 * 8)
            tm = min(rows, max_rows)
            while rows % tm:
                tm -= 8
            return (rows, lanes), tm
    return None, None


def _pallas_materialize(x: jax.Array) -> jax.Array:
    """Copy `x` through a tiled Pallas VMEM kernel (bit-exact, same shape)."""
    orig_shape, dtype = x.shape, x.dtype
    total = math.prod(orig_shape) if orig_shape else 1
    layout, tm = _choose_layout(total, jnp.dtype(dtype).itemsize)

    if layout is None:
        # Odd-sized payload: one full-extent block (legal for any shape).
        # TODO(synk): a huge payload with no 8*128 factorization would need a
        # pad-and-slice path to stay within VMEM; not needed for this module.
        x2d = x.reshape(1, total)
        y2d = pl.pallas_call(
            _copy_kernel,
            out_shape=jax.ShapeDtypeStruct((1, total), dtype),
            input_output_aliases={0: 0},
        )(x2d)
        return y2d.reshape(orig_shape)

    rows, lanes = layout
    x2d = x.reshape(rows, lanes)
    y2d = pl.pallas_call(
        _copy_kernel,
        out_shape=jax.ShapeDtypeStruct((rows, lanes), dtype),
        grid=(rows // tm,),
        in_specs=[pl.BlockSpec((tm, lanes), lambda i: (i, 0))],
        out_specs=pl.BlockSpec((tm, lanes), lambda i: (i, 0)),
        input_output_aliases={0: 0},
    )(x2d)
    return y2d.reshape(orig_shape)


class Reshape:
    """JAX/Pallas equivalent of the PyTorch Reshape module.

    Default (`materialize=False`) is a metadata-only reshape, matching the
    O(1) cost of torch's .view.  `materialize=True` streams the payload
    through the tiled Pallas copy kernel.
    """

    def __init__(self, *args, materialize: bool = False):
        self.shape = tuple(args)
        self.materialize = materialize

    def __call__(self, x: jax.Array) -> jax.Array:
        batch = x.shape[0]
        n_in = math.prod(x.shape[1:]) if x.ndim > 1 else 1
        n_out = math.prod(self.shape) if self.shape else 1
        assert n_in == n_out, (
            f"cannot view {x.shape} as {(batch,) + self.shape}: "
            f"{n_in} != {n_out}"
        )
        out_shape = (batch,) + self.shape
        if not self.materialize:
            # Metadata-only, zero HBM traffic (== torch .view cost).
            return x.reshape(out_shape)
        # Forced materialization: bit-exact Pallas copy + metadata reshape.
        return _pallas_materialize(x).reshape(out_shape)


if __name__ == "__main__":
    key = jax.random.PRNGKey(0)
    # Small NCHW input consistent with a conv feature map: (B, C, H, W)
    x = jax.random.normal(key, (2, 4, 16, 16), dtype=jnp.float32)

    # Reference (== torch .view), computed up front.
    y_ref = jax.block_until_ready(x.reshape((2, 16, 64)))

    # Default path: metadata-only reshape (recommended, zero cost).
    y0 = jax.block_until_ready(Reshape(16, 64)(x))
    assert y0.shape == (2, 16, 64) and y0.dtype == x.dtype
    assert bool(jnp.array_equal(y0, y_ref))

    # Materialized path: runs the Pallas copy kernel (lane-dense blocks,
    # aliased output).  (2,4,16,16) flattens to a (8, 256) slab, 1 grid step.
    y1 = jax.block_until_ready(Reshape(16, 64, materialize=True)(x))
    assert y1.shape == (2, 16, 64) and y1.dtype == x.dtype
    assert bool(jnp.array_equal(y1, y_ref))

    # Odd-sized payload (2*3*5*7 = 210 elems) exercises the full-extent
    # fallback block — no multiple-of-128 requirement anymore.
    x_odd = jax.random.normal(jax.random.PRNGKey(1), (2, 3, 5, 7),
                              dtype=jnp.float32)
    y_odd_ref = jax.block_until_ready(x_odd.reshape(2, 105))
    y_odd = jax.block_until_ready(Reshape(105, materialize=True)(x_odd))
    assert y_odd.shape == (2, 105) and bool(jnp.array_equal(y_odd, y_odd_ref))

    print("KERNEL_OK")
</pallas_src>

<mosaic_0001>
module attributes {stable_mosaic.version = 11 : i64} {
  func.func @_copy_kernel(%arg0: i32, %arg1: memref<8x256xf32, #tpu.memory_space<vmem>>, %arg2: memref<8x256xf32, #tpu.memory_space<vmem>>) attributes {dimension_semantics = [#tpu.dimension_semantics<arbitrary>], iteration_bounds = array<i64: 1>, scalar_prefetch = 0 : i64, scratch_operands = 0 : i64, tpu.core_type = #tpu.core_type<tc>, window_params = [{transform_indices = @transform_0, window_bounds = array<i64: 8, 256>}, {transform_indices = @transform_1, window_bounds = array<i64: 8, 256>}]} {
    %c0 = arith.constant 0 : index
    %c0_0 = arith.constant 0 : index
    %0 = vector.load %arg1[%c0, %c0_0] : memref<8x256xf32, #tpu.memory_space<vmem>>, vector<8x256xf32>
    %c0_1 = arith.constant 0 : index
    %c0_2 = arith.constant 0 : index
    %1 = vector.load %arg2[%c0_1, %c0_2] : memref<8x256xf32, #tpu.memory_space<vmem>>, vector<8x256xf32>
    tpu.vector_store %arg2[%c0_1, %c0_2], %0 {strides = array<i32>} : memref<8x256xf32, #tpu.memory_space<vmem>>, vector<8x256xf32>,
    return
  }
  func.func @transform_0(%arg0: i32) -> (i32, i32) {
    %c0_i32 = arith.constant 0 : i32
    %c0_i32_0 = arith.constant 0 : i32
    return %arg0, %c0_i32 : i32, i32
  }
  func.func @transform_1(%arg0: i32) -> (i32, i32) {
    %c0_i32 = arith.constant 0 : i32
    %c0_i32_0 = arith.constant 0 : i32
    return %arg0, %c0_i32 : i32, i32
  }
}

</mosaic_0001>

<bundles_post_ra>
// kernel: tpu_custom_call.1
= control target key start
LH: loop header
LB: loop body
LE: loop exit
PB: predicated region body
PF: predicated region fallthrough
CT: control target
= control target key end

     0   :  { %6 = vsyncpa [#allocation3], 0  ;;  %s126_s0 = inlined_call_operand.hbm [shape: f32[8,256], index: 0, kind: input, shape index: {}, may-alias: {0,1}]   ;;  %s127_s1 = inlined_call_operand.hbm [shape: f32[8,256], index: 1, kind: output, shape index: {}, may-alias: {0,1}]  }
   0x1   :  { %7 = vsyncpa [#allocation4], 0  ;;  %s90_s6 = smov [#allocation2]   ;;  %s42_s10 = scalar_lea.hbm %s126_s0, 256 }
   0x2   :  { %s14_s7 = sshll.u32 %s90_s6, 4  ;;  %p43_p0 = scmp.ne.s32.totalorder %s126_s0, %s42_s10  ;;  %s15_s7 = int_to_ptr.vmem [resolvable:$true] %s14_s7 }
   0x3   :  { %p46_p1 = scmp.lt.u32.totalorder %s42_s10, %s126_s0 }
   0x5   :  { %p48_p2 = pnand %p46_p1, %p43_p0 }
   0x7   :  { %51 = shalt.err (!%p48_p2)
}
   0x8   :  { %s52_s15 = scalar_lea.vmem %s15_s7, 256  ;;  %p57_p4 = scmp.lt.s32.totalorder %s15_s7, %s15_s7 }
   0x9   :  { %p53_p3 = scmp.ne.s32.totalorder %s15_s7, %s52_s15  ;;  %p58_p5 = scmp.lt.s32.totalorder %s52_s15, %s52_s15 }
   0xb   :  { %p59_p6 = por %p58_p5, %p57_p4 }
   0xd   :  { %p60_p7 = pnand %p59_p6, %p53_p3 }
   0xf   :  { %63 = shalt.err (!%p60_p7)
}
  0x10   :  { %17 = dma.hbm_to_vmem [thread:$0]  %s126_s0, 256, %s15_s7, [#allocation3]  }
  0x11   :  { %86 = dma.done.wait [#allocation3], 256  }
  0x12   :  { %87 = vsyncadd [#allocation3], 4294967040  ;;  %s91_s18 = smov [#allocation5]   ;;  %v21_v0 = vld [vmem:[#allocation2] sm:$0xff]  ;;  %v22_v1 = vld [vmem:[#allocation2 + $0x8] sm:$0xff] }
  0x13   :  { %s31_s19 = sshll.u32 %s91_s18, 4  ;;  %23 = vst [vmem:[#allocation5] sm:$0xff] %v21_v0  ;;  %24 = vst [vmem:[#allocation5 + $0x8] sm:$0xff] %v22_v1  ;;  %s32_s19 = int_to_ptr.vmem [resolvable:$true] %s31_s19 }
  0x14   :  { %s64_s20 = scalar_lea.vmem %s32_s19, 256  ;;  %p69_p9 = scmp.lt.s32.totalorder %s32_s19, %s32_s19 }
  0x15   :  { %p65_p8 = scmp.ne.s32.totalorder %s32_s19, %s64_s20  ;;  %p70_p10 = scmp.lt.s32.totalorder %s64_s20, %s64_s20 }
  0x17   :  { %p71_p11 = por %p70_p10, %p69_p9 }
  0x19   :  { %p72_p12 = pnand %p71_p11, %p65_p8 }
  0x1b   :  { %75 = shalt.err (!%p72_p12)
}
  0x1c   :  { %s76_s0 = scalar_lea.hbm %s127_s1, 256 }
  0x1d   :  { %p77_p13 = scmp.ne.s32.totalorder %s127_s1, %s76_s0  ;;  %p80_p0 = scmp.lt.u32.totalorder %s76_s0, %s127_s1 }
  0x1f   :  { %p82_p1 = pnand %p80_p0, %p77_p13 }
  0x21   :  { %85 = shalt.err (!%p82_p1)
}
  0x22   :  { %34 = dma.vmem_to_hbm [thread:$0]  %s32_s19, 256, %s127_s1, [#allocation4]  }
  0x23   :  { %88 = dma.done.wait [#allocation4], 256  }
  0x24   :  { %89 = vsyncadd [#allocation4], 4294967040 }
  0x25   :  { %38 = vsyncpa [#allocation3], 1 }
  0x26   :  { %39 = vsyncpa [#allocation4], 1 }

</bundles_post_ra>
